<compile_context>
chip_gen: v5e
topology: v5e:2x2
jax: 0.10.0
libtpu: 0.0.40
codegen_flags: <defaults>
</compile_context>

<pallas_src>
import functools
from collections.abc import Iterable

import jax
import jax.numpy as jnp
import numpy as np
from jax import lax
from jax.experimental import pallas as pl
from jax.experimental.pallas import tpu as pltpu


def _fused_encoder_kernel(*refs, cfgs, tb):
    """Fused [Conv1d('same') -> ReLU -> MaxPool1d(2)] x len(cfgs) on one batch tile.

    refs = (x_ref, w0, b0, m0, w1, b1, m1, ..., o_ref)
      x_ref : (TB, L0, C0)        input tile, channels-last
      wi    : (K_i*Cin_i, Cout_i) conv weight, im2col-flattened on the host
      bi    : (1, Cout_i)         conv bias
      mi    : (TB*L_i, K_i*Cin_i) 0/1 'same'-padding mask for the im2col matrix
                                  (zeroes taps crossing a batch-element boundary)
      o_ref : (TB, L_f, C_f)      final activation tile
    cfgs = ((K, L_in, Cin, Cout), ...) static per-layer shapes; tb = batch tile.
    """
    x_ref, o_ref = refs[0], refs[-1]
    layer_refs = refs[1:-1]
    f32 = jnp.float32

    # Flatten the batch tile to (TB*L0, C0) rows (batch-major) so every matmul of
    # the stack is fed TB*L rows.  Per-element loads + a sublane concat keep the
    # lowering trivial (no 3-D shape_cast needed).
    x = jnp.concatenate([x_ref[t, :, :].astype(f32) for t in range(tb)], axis=0)

    for i, (K, L, Cin, Cout) in enumerate(cfgs):
        w = layer_refs[3 * i][...].astype(f32)        # (K*Cin, Cout)
        b = layer_refs[3 * i + 1][...].astype(f32)    # (1, Cout)
        msk = layer_refs[3 * i + 2][...]              # (rows, K*Cin)
        rows = tb * L
        pad_lo = (K - 1) // 2                         # PyTorch 'same': left = (K-1)//2,
        pad_hi = K - 1 - pad_lo                       # extra pad on the right for even K.

        # ---- im2col: zero-fill the halo in-kernel, take K shifted row windows of
        # the padded copy, concatenate them on the lane axis, and mask taps that
        # would leak across a batch-element boundary.  One MXU matmul with a
        # K*Cin contraction replaces K shifted matmuls + K adds.
        pieces = []
        if pad_lo:
            pieces.append(jnp.zeros((pad_lo, Cin), f32))
        pieces.append(x)
        if pad_hi:
            pieces.append(jnp.zeros((pad_hi, Cin), f32))
        xp = jnp.concatenate(pieces, axis=0) if len(pieces) > 1 else x   # (rows+K-1, Cin)

        xcol = jnp.concatenate([xp[k:k + rows, :] for k in range(K)], axis=1)  # (rows, K*Cin)
        xcol = xcol * msk

        y = jnp.dot(xcol, w, preferred_element_type=f32) + b    # Conv1d, bias in epilogue
        y = jnp.maximum(y, 0.0)                                  # ReLU

        # ---- MaxPool1d(kernel=2, stride=2), entirely in vregs.  The stride-2 row
        # selection is expressed as two tiny 0/1 selection matmuls (the MXU is far
        # from saturated at these channel counts); L is even, so row pairs never
        # straddle a batch element.  For very large TB*L one would switch to a
        # reshape/strided pooling instead of the O(rows^2) selector matrices.
        lh = L // 2
        rows_h = tb * lh
        i_out = lax.broadcasted_iota(jnp.int32, (rows_h, rows), 0)
        j_src = lax.broadcasted_iota(jnp.int32, (rows_h, rows), 1)
        sel_even = (j_src == 2 * i_out).astype(f32)
        sel_odd = (j_src == 2 * i_out + 1).astype(f32)
        x = jnp.maximum(jnp.dot(sel_even, y, preferred_element_type=f32),
                        jnp.dot(sel_odd, y, preferred_element_type=f32))   # (rows_h, Cout)

    _, l_last, _, c_last = cfgs[-1]
    lf = l_last // 2
    for t in range(tb):                               # un-flatten rows back to (TB, Lf, Cf)
        o_ref[t, :, :] = x[t * lf:(t + 1) * lf, :].astype(o_ref.dtype)


def _same_pad_mask(tb, L, cin, K):
    """Host-built 0/1 mask for one layer's im2col matrix: entry (r, k*Cin+c) is 1 iff
    tap k of flattened row r stays inside that row's batch element (implements the
    'same' zero padding at tile edges AND interior batch-element boundaries)."""
    pad_lo = (K - 1) // 2
    l = np.arange(tb * L) % L
    cols = []
    for k in range(K):
        off = k - pad_lo
        valid = ((l + off >= 0) & (l + off < L)).astype(np.float32)      # (tb*L,)
        cols.append(np.repeat(valid[:, None], cin, axis=1))
    return np.concatenate(cols, axis=1)                                  # (tb*L, K*Cin)


def fused_conv_encoder_forward(params, x_nlc, layer_kwargs):
    """Run the whole ConvEncoderLayer1D stack in a single Pallas kernel.

    x_nlc: (N, L, C) channels-last.  Returns (N, L_out, C_out) channels-last.
    """
    N, L, C = x_nlc.shape

    # Batch tile: aim for >=~256 rows (TB*L) per grid step so the MXU row dimension
    # is filled and the ~0.35us per-grid-step overhead is amortized.
    TB = max(1, min(N, 32, max(1, 256 // max(1, L))))
    N_pad = pl.cdiv(N, TB) * TB

    cfgs = []
    layer_inputs = []
    L_cur, C_cur = L, C
    for p, kw in zip(params, layer_kwargs):
        K = int(kw.get("kernel_size", 3))
        w, b = p["w"], p["b"]
        kp, cin, cout = w.shape
        if kp != K or cin != C_cur:
            raise ValueError(f"layer weight {w.shape} inconsistent with kernel_size={K}, in_ch={C_cur}")
        if L_cur % 2 != 0:
            # MaxPool1d(2) on an odd length silently drops the last sample in
            # PyTorch (floor); refuse instead of matching that silently.
            raise ValueError(f"layer input length {L_cur} must be even for MaxPool1d(2)")
        cfgs.append((K, L_cur, cin, cout))
        layer_inputs.append(w.reshape(K * cin, cout).astype(jnp.float32))   # im2col-flattened weight
        layer_inputs.append(b.reshape(1, cout).astype(jnp.float32))
        layer_inputs.append(jnp.asarray(_same_pad_mask(TB, L_cur, cin, K)))
        L_cur //= 2
        C_cur = cout
    Lf, Cf = L_cur, C_cur

    x_in = x_nlc if N_pad == N else jnp.pad(x_nlc, ((0, N_pad - N), (0, 0), (0, 0)))

    in_specs = [pl.BlockSpec((TB, L, C), lambda n: (n, 0, 0))]
    for (K, Lc, cin, cout) in cfgs:
        in_specs.append(pl.BlockSpec((K * cin, cout), lambda n: (0, 0)))   # same weight block
        in_specs.append(pl.BlockSpec((1, cout), lambda n: (0, 0)))         #   every grid step
        in_specs.append(pl.BlockSpec((TB * Lc, K * cin), lambda n: (0, 0)))

    kernel = functools.partial(_fused_encoder_kernel, cfgs=tuple(cfgs), tb=TB)
    out = pl.pallas_call(
        kernel,
        out_shape=jax.ShapeDtypeStruct((N_pad, Lf, Cf), x_nlc.dtype),
        grid_spec=pltpu.PrefetchScalarGridSpec(
            num_scalar_prefetch=0,
            grid=(N_pad // TB,),
            in_specs=in_specs,
            out_specs=pl.BlockSpec((TB, Lf, Cf), lambda n: (n, 0, 0)),
        ),
        # The batch-tile axis carries no state across steps: mark it "parallel" so
        # v7x's two TensorCores can shard it (no effect on single-TC v5e/v6e).
        compiler_params=pltpu.CompilerParams(dimension_semantics=("parallel",)),
    )(x_in, *layer_inputs)
    return out if N_pad == N else out[:N]


class ConvEncoderLayer1D:
    """Conv1d(in_ch, out_ch, kernel_size, padding='same') -> ReLU -> MaxPool1d(2).

    Parameters are stored channels-last: w (K, Cin, Cout), b (1, Cout)."""

    @staticmethod
    def init(key, *, in_ch, out_ch, kernel_size=3):
        kw, kb = jax.random.split(key)
        bound = 1.0 / float(in_ch * kernel_size) ** 0.5    # PyTorch default Conv1d init range
        w = jax.random.uniform(kw, (int(kernel_size), in_ch, out_ch), jnp.float32, -bound, bound)
        b = jax.random.uniform(kb, (1, out_ch), jnp.float32, -bound, bound)
        return {"w": w, "b": b}

    @staticmethod
    def apply(p, x_nlc, *, in_ch, out_ch, kernel_size=3):
        del in_ch, out_ch  # shapes are carried by the params
        return fused_conv_encoder_forward([p], x_nlc, [{"kernel_size": kernel_size}])


class AENetwork:
    """JAX/Pallas port of the PyTorch AENetwork: a variable-length sequential stack
    of one repeated layer type, with per-layer kwargs broadcast like the torch
    version.  For ConvEncoderLayer1D the whole stack runs fused inside a single
    Pallas kernel (activations never round-trip through HBM between layers)."""

    def __init__(self, layer, **params):
        self.layer = layer
        self.params = params
        self.layer_kwargs = self._gen_layer_kwargs()

    @property
    def num_layers(self):
        return len(self.layer_kwargs)

    def _gen_layer_kwargs(self):
        def aux(val, idx):
            if isinstance(val, Iterable) and not isinstance(val, str):
                return val[idx]
            return val

        def find_len(val):
            if isinstance(val, Iterable) and not isinstance(val, str):
                return len(val)
            return 0

        n = max(map(find_len, self.params.values()))
        return [{k: aux(v, i) for k, v in self.params.items()} for i in range(n)]

    def init(self, key):
        keys = jax.random.split(key, self.num_layers)
        return [self.layer.init(k, **kw) for k, kw in zip(keys, self.layer_kwargs)]

    def __call__(self, params, x_ncl):
        # x_ncl: (N, C, L), matching PyTorch Conv1d layout; compute channels-last inside.
        x = jnp.transpose(x_ncl, (0, 2, 1))                     # -> (N, L, C)
        if self.layer is ConvEncoderLayer1D:
            x = fused_conv_encoder_forward(params, x, self.layer_kwargs)
        else:
            # TODO(synk): other layer types fall back to per-layer apply (no fusion).
            for p, kw in zip(params, self.layer_kwargs):
                x = self.layer.apply(p, x, **kw)
        return jnp.transpose(x, (0, 2, 1))                      # -> (N, C_out, L_out)


def _reference_forward(params, x_ncl, layer_kwargs):
    """Pure-JAX reference (no Pallas) for a correctness check."""
    x = jnp.transpose(x_ncl, (0, 2, 1))
    for p, kw in zip(params, layer_kwargs):
        K = int(kw.get("kernel_size", 3))
        w, b = p["w"], p["b"]
        N, L, _ = x.shape
        pad_lo = (K - 1) // 2
        xp = jnp.pad(x, ((0, 0), (pad_lo, K - 1 - pad_lo), (0, 0)))
        acc = jnp.zeros((N, L, w.shape[2]), jnp.float32) + b
        for k in range(K):
            acc = acc + jnp.einsum("nlc,cd->nld", xp[:, k:k + L, :], w[k])
        acc = jnp.maximum(acc, 0.0)
        x = jnp.max(acc.reshape(N, L // 2, 2, -1), axis=2)
    return jnp.transpose(x, (0, 2, 1))


if __name__ == "__main__":
    key = jax.random.PRNGKey(0)
    kx, kp = jax.random.split(key)

    # 3-layer encoder from the docstring example: in_ch=(2,8,16), out_ch=(8,16,32).
    x = jax.random.normal(kx, (2, 2, 16), jnp.float32)          # (N, C, L)
    net = AENetwork(layer=ConvEncoderLayer1D,
                    in_ch=(2, 8, 16), out_ch=(8, 16, 32), kernel_size=3)
    params = net.init(kp)

    y = jax.block_until_ready(net(params, x))                   # (2, 32, 2)
    assert y.shape == (2, 32, 2), y.shape

    y_ref = _reference_forward(params, x, net.layer_kwargs)
    assert jnp.allclose(y, y_ref, atol=1e-4), "Pallas output mismatch vs reference"

    print("KERNEL_OK")
</pallas_src>

<mosaic_0001>
module attributes {stable_mosaic.version = 11 : i64} {
  func.func @_fused_encoder_kernel(%arg0: i32, %arg1: memref<2x16x2xf32, #tpu.memory_space<vmem>>, %arg2: memref<6x8xf32, #tpu.memory_space<vmem>>, %arg3: memref<1x8xf32, #tpu.memory_space<vmem>>, %arg4: memref<32x6xf32, #tpu.memory_space<vmem>>, %arg5: memref<24x16xf32, #tpu.memory_space<vmem>>, %arg6: memref<1x16xf32, #tpu.memory_space<vmem>>, %arg7: memref<16x24xf32, #tpu.memory_space<vmem>>, %arg8: memref<48x32xf32, #tpu.memory_space<vmem>>, %arg9: memref<1x32xf32, #tpu.memory_space<vmem>>, %arg10: memref<8x48xf32, #tpu.memory_space<vmem>>, %arg11: memref<2x2x32xf32, #tpu.memory_space<vmem>>) attributes {dimension_semantics = [#tpu.dimension_semantics<parallel>], iteration_bounds = array<i64: 1>, scalar_prefetch = 0 : i64, scratch_operands = 0 : i64, tpu.core_type = #tpu.core_type<tc>, window_params = [{transform_indices = @transform_0, window_bounds = array<i64: 2, 16, 2>}, {pipeline_mode = #tpu.pipeline_mode<synchronous>, transform_indices = @transform_1, window_bounds = array<i64: 6, 8>}, {pipeline_mode = #tpu.pipeline_mode<synchronous>, transform_indices = @transform_2, window_bounds = array<i64: 1, 8>}, {pipeline_mode = #tpu.pipeline_mode<synchronous>, transform_indices = @transform_3, window_bounds = array<i64: 32, 6>}, {pipeline_mode = #tpu.pipeline_mode<synchronous>, transform_indices = @transform_4, window_bounds = array<i64: 24, 16>}, {pipeline_mode = #tpu.pipeline_mode<synchronous>, transform_indices = @transform_5, window_bounds = array<i64: 1, 16>}, {pipeline_mode = #tpu.pipeline_mode<synchronous>, transform_indices = @transform_6, window_bounds = array<i64: 16, 24>}, {pipeline_mode = #tpu.pipeline_mode<synchronous>, transform_indices = @transform_7, window_bounds = array<i64: 48, 32>}, {pipeline_mode = #tpu.pipeline_mode<synchronous>, transform_indices = @transform_8, window_bounds = array<i64: 1, 32>}, {pipeline_mode = #tpu.pipeline_mode<synchronous>, transform_indices = @transform_9, window_bounds = array<i64: 8, 48>}, {transform_indices = @transform_10, window_bounds = array<i64: 2, 2, 32>}]} {
    %c0 = arith.constant 0 : index
    %c0_0 = arith.constant 0 : index
    %c0_1 = arith.constant 0 : index
    %0 = vector.load %arg1[%c0, %c0_0, %c0_1] : memref<2x16x2xf32, #tpu.memory_space<vmem>>, vector<1x16x2xf32>
    %1 = vector.shape_cast %0 : vector<1x16x2xf32> to vector<16x2xf32>
    %c1 = arith.constant 1 : index
    %c0_2 = arith.constant 0 : index
    %c0_3 = arith.constant 0 : index
    %2 = vector.load %arg1[%c1, %c0_2, %c0_3] : memref<2x16x2xf32, #tpu.memory_space<vmem>>, vector<1x16x2xf32>
    %3 = vector.shape_cast %2 : vector<1x16x2xf32> to vector<16x2xf32>
    %4 = tpu.concatenate %1, %3 in 0 : vector<16x2xf32>, vector<16x2xf32> -> vector<32x2xf32>
    %c0_4 = arith.constant 0 : index
    %c0_5 = arith.constant 0 : index
    %5 = vector.load %arg2[%c0_4, %c0_5] : memref<6x8xf32, #tpu.memory_space<vmem>>, vector<6x8xf32>
    %c0_6 = arith.constant 0 : index
    %c0_7 = arith.constant 0 : index
    %6 = vector.load %arg3[%c0_6, %c0_7] : memref<1x8xf32, #tpu.memory_space<vmem>>, vector<1x8xf32>
    %c0_8 = arith.constant 0 : index
    %c0_9 = arith.constant 0 : index
    %7 = vector.load %arg4[%c0_8, %c0_9] : memref<32x6xf32, #tpu.memory_space<vmem>>, vector<32x6xf32>
    %cst = arith.constant 0.000000e+00 : f32
    %8 = vector.broadcast %cst : f32 to vector<1x2xf32>
    %cst_10 = arith.constant 0.000000e+00 : f32
    %9 = vector.broadcast %cst_10 : f32 to vector<1x2xf32>
    %10 = tpu.concatenate %8, %4, %9 in 0 : vector<1x2xf32>, vector<32x2xf32>, vector<1x2xf32> -> vector<34x2xf32>
    %11 = vector.extract_strided_slice %10 {offsets = [0, 0], sizes = [32, 2], strides = [1, 1]} : vector<34x2xf32> to vector<32x2xf32>
    %12 = vector.extract_strided_slice %10 {offsets = [1, 0], sizes = [32, 2], strides = [1, 1]} : vector<34x2xf32> to vector<32x2xf32>
    %13 = vector.extract_strided_slice %10 {offsets = [2, 0], sizes = [32, 2], strides = [1, 1]} : vector<34x2xf32> to vector<32x2xf32>
    %14 = tpu.concatenate %11, %12, %13 in 1 : vector<32x2xf32>, vector<32x2xf32>, vector<32x2xf32> -> vector<32x6xf32>
    %15 = arith.mulf %14, %7 : vector<32x6xf32>
    %cst_11 = arith.constant dense<0.000000e+00> : vector<32x8xf32>
    %16 = tpu.matmul %15, %5, %cst_11 {dimension_numbers = #tpu.dot_dimension_numbers<[1], [0], [0], [1], [0, 0, 1, 1], [], []>} : vector<32x6xf32>, vector<6x8xf32>, vector<32x8xf32> -> vector<32x8xf32>
    %17 = vector.broadcast %6 : vector<1x8xf32> to vector<32x8xf32>
    %18 = arith.addf %16, %17 : vector<32x8xf32>
    %cst_12 = arith.constant 0.000000e+00 : f32
    %19 = vector.broadcast %cst_12 : f32 to vector<32x8xf32>
    %20 = arith.maximumf %18, %19 : vector<32x8xf32>
    %21 = tpu.iota {dimensions = array<i32: 0>} : vector<16x32xi32>
    %22 = tpu.iota {dimensions = array<i32: 1>} : vector<16x32xi32>
    %c2_i32 = arith.constant 2 : i32
    %23 = vector.broadcast %c2_i32 : i32 to vector<16x32xi32>
    %24 = arith.muli %23, %21 : vector<16x32xi32>
    %25 = arith.cmpi eq, %22, %24 : vector<16x32xi32>
    %26 = arith.extui %25 : vector<16x32xi1> to vector<16x32xi32>
    %27 = arith.sitofp %26 : vector<16x32xi32> to vector<16x32xf32>
    %c2_i32_13 = arith.constant 2 : i32
    %28 = vector.broadcast %c2_i32_13 : i32 to vector<16x32xi32>
    %29 = arith.muli %28, %21 : vector<16x32xi32>
    %c1_i32 = arith.constant 1 : i32
    %30 = vector.broadcast %c1_i32 : i32 to vector<16x32xi32>
    %31 = arith.addi %29, %30 : vector<16x32xi32>
    %32 = arith.cmpi eq, %22, %31 : vector<16x32xi32>
    %33 = arith.extui %32 : vector<16x32xi1> to vector<16x32xi32>
    %34 = arith.sitofp %33 : vector<16x32xi32> to vector<16x32xf32>
    %cst_14 = arith.constant dense<0.000000e+00> : vector<16x8xf32>
    %35 = tpu.matmul %27, %20, %cst_14 {dimension_numbers = #tpu.dot_dimension_numbers<[1], [0], [0], [1], [0, 0, 1, 1], [], []>} : vector<16x32xf32>, vector<32x8xf32>, vector<16x8xf32> -> vector<16x8xf32>
    %cst_15 = arith.constant dense<0.000000e+00> : vector<16x8xf32>
    %36 = tpu.matmul %34, %20, %cst_15 {dimension_numbers = #tpu.dot_dimension_numbers<[1], [0], [0], [1], [0, 0, 1, 1], [], []>} : vector<16x32xf32>, vector<32x8xf32>, vector<16x8xf32> -> vector<16x8xf32>
    %37 = arith.maximumf %35, %36 : vector<16x8xf32>
    %c0_16 = arith.constant 0 : index
    %c0_17 = arith.constant 0 : index
    %38 = vector.load %arg5[%c0_16, %c0_17] : memref<24x16xf32, #tpu.memory_space<vmem>>, vector<24x16xf32>
    %c0_18 = arith.constant 0 : index
    %c0_19 = arith.constant 0 : index
    %39 = vector.load %arg6[%c0_18, %c0_19] : memref<1x16xf32, #tpu.memory_space<vmem>>, vector<1x16xf32>
    %c0_20 = arith.constant 0 : index
    %c0_21 = arith.constant 0 : index
    %40 = vector.load %arg7[%c0_20, %c0_21] : memref<16x24xf32, #tpu.memory_space<vmem>>, vector<16x24xf32>
    %cst_22 = arith.constant 0.000000e+00 : f32
    %41 = vector.broadcast %cst_22 : f32 to vector<1x8xf32>
    %cst_23 = arith.constant 0.000000e+00 : f32
    %42 = vector.broadcast %cst_23 : f32 to vector<1x8xf32>
    %43 = tpu.concatenate %41, %37, %42 in 0 : vector<1x8xf32>, vector<16x8xf32>, vector<1x8xf32> -> vector<18x8xf32>
    %44 = vector.extract_strided_slice %43 {offsets = [0, 0], sizes = [16, 8], strides = [1, 1]} : vector<18x8xf32> to vector<16x8xf32>
    %45 = vector.extract_strided_slice %43 {offsets = [1, 0], sizes = [16, 8], strides = [1, 1]} : vector<18x8xf32> to vector<16x8xf32>
    %46 = vector.extract_strided_slice %43 {offsets = [2, 0], sizes = [16, 8], strides = [1, 1]} : vector<18x8xf32> to vector<16x8xf32>
    %47 = tpu.concatenate %44, %45, %46 in 1 : vector<16x8xf32>, vector<16x8xf32>, vector<16x8xf32> -> vector<16x24xf32>
    %48 = arith.mulf %47, %40 : vector<16x24xf32>
    %cst_24 = arith.constant dense<0.000000e+00> : vector<16x16xf32>
    %49 = tpu.matmul %48, %38, %cst_24 {dimension_numbers = #tpu.dot_dimension_numbers<[1], [0], [0], [1], [0, 0, 1, 1], [], []>} : vector<16x24xf32>, vector<24x16xf32>, vector<16x16xf32> -> vector<16x16xf32>
    %50 = vector.broadcast %39 : vector<1x16xf32> to vector<16x16xf32>
    %51 = arith.addf %49, %50 : vector<16x16xf32>
    %cst_25 = arith.constant 0.000000e+00 : f32
    %52 = vector.broadcast %cst_25 : f32 to vector<16x16xf32>
    %53 = arith.maximumf %51, %52 : vector<16x16xf32>
    %54 = tpu.iota {dimensions = array<i32: 0>} : vector<8x16xi32>
    %55 = tpu.iota {dimensions = array<i32: 1>} : vector<8x16xi32>
    %c2_i32_26 = arith.constant 2 : i32
    %56 = vector.broadcast %c2_i32_26 : i32 to vector<8x16xi32>
    %57 = arith.muli %56, %54 : vector<8x16xi32>
    %58 = arith.cmpi eq, %55, %57 : vector<8x16xi32>
    %59 = arith.extui %58 : vector<8x16xi1> to vector<8x16xi32>
    %60 = arith.sitofp %59 : vector<8x16xi32> to vector<8x16xf32>
    %c2_i32_27 = arith.constant 2 : i32
    %61 = vector.broadcast %c2_i32_27 : i32 to vector<8x16xi32>
    %62 = arith.muli %61, %54 : vector<8x16xi32>
    %c1_i32_28 = arith.constant 1 : i32
    %63 = vector.broadcast %c1_i32_28 : i32 to vector<8x16xi32>
    %64 = arith.addi %62, %63 : vector<8x16xi32>
    %65 = arith.cmpi eq, %55, %64 : vector<8x16xi32>
    %66 = arith.extui %65 : vector<8x16xi1> to vector<8x16xi32>
    %67 = arith.sitofp %66 : vector<8x16xi32> to vector<8x16xf32>
    %cst_29 = arith.constant dense<0.000000e+00> : vector<8x16xf32>
    %68 = tpu.matmul %60, %53, %cst_29 {dimension_numbers = #tpu.dot_dimension_numbers<[1], [0], [0], [1], [0, 0, 1, 1], [], []>} : vector<8x16xf32>, vector<16x16xf32>, vector<8x16xf32> -> vector<8x16xf32>
    %cst_30 = arith.constant dense<0.000000e+00> : vector<8x16xf32>
    %69 = tpu.matmul %67, %53, %cst_30 {dimension_numbers = #tpu.dot_dimension_numbers<[1], [0], [0], [1], [0, 0, 1, 1], [], []>} : vector<8x16xf32>, vector<16x16xf32>, vector<8x16xf32> -> vector<8x16xf32>
    %70 = arith.maximumf %68, %69 : vector<8x16xf32>
    %c0_31 = arith.constant 0 : index
    %c0_32 = arith.constant 0 : index
    %71 = vector.load %arg8[%c0_31, %c0_32] : memref<48x32xf32, #tpu.memory_space<vmem>>, vector<48x32xf32>
    %c0_33 = arith.constant 0 : index
    %c0_34 = arith.constant 0 : index
    %72 = vector.load %arg9[%c0_33, %c0_34] : memref<1x32xf32, #tpu.memory_space<vmem>>, vector<1x32xf32>
    %c0_35 = arith.constant 0 : index
    %c0_36 = arith.constant 0 : index
    %73 = vector.load %arg10[%c0_35, %c0_36] : memref<8x48xf32, #tpu.memory_space<vmem>>, vector<8x48xf32>
    %cst_37 = arith.constant 0.000000e+00 : f32
    %74 = vector.broadcast %cst_37 : f32 to vector<1x16xf32>
    %cst_38 = arith.constant 0.000000e+00 : f32
    %75 = vector.broadcast %cst_38 : f32 to vector<1x16xf32>
    %76 = tpu.concatenate %74, %70, %75 in 0 : vector<1x16xf32>, vector<8x16xf32>, vector<1x16xf32> -> vector<10x16xf32>
    %77 = vector.extract_strided_slice %76 {offsets = [0, 0], sizes = [8, 16], strides = [1, 1]} : vector<10x16xf32> to vector<8x16xf32>
    %78 = vector.extract_strided_slice %76 {offsets = [1, 0], sizes = [8, 16], strides = [1, 1]} : vector<10x16xf32> to vector<8x16xf32>
    %79 = vector.extract_strided_slice %76 {offsets = [2, 0], sizes = [8, 16], strides = [1, 1]} : vector<10x16xf32> to vector<8x16xf32>
    %80 = tpu.concatenate %77, %78, %79 in 1 : vector<8x16xf32>, vector<8x16xf32>, vector<8x16xf32> -> vector<8x48xf32>
    %81 = arith.mulf %80, %73 : vector<8x48xf32>
    %cst_39 = arith.constant dense<0.000000e+00> : vector<8x32xf32>
    %82 = tpu.matmul %81, %71, %cst_39 {dimension_numbers = #tpu.dot_dimension_numbers<[1], [0], [0], [1], [0, 0, 1, 1], [], []>} : vector<8x48xf32>, vector<48x32xf32>, vector<8x32xf32> -> vector<8x32xf32>
    %83 = vector.broadcast %72 : vector<1x32xf32> to vector<8x32xf32>
    %84 = arith.addf %82, %83 : vector<8x32xf32>
    %cst_40 = arith.constant 0.000000e+00 : f32
    %85 = vector.broadcast %cst_40 : f32 to vector<8x32xf32>
    %86 = arith.maximumf %84, %85 : vector<8x32xf32>
    %87 = tpu.iota {dimensions = array<i32: 0>} : vector<4x8xi32>
    %88 = tpu.iota {dimensions = array<i32: 1>} : vector<4x8xi32>
    %c2_i32_41 = arith.constant 2 : i32
    %89 = vector.broadcast %c2_i32_41 : i32 to vector<4x8xi32>
    %90 = arith.muli %89, %87 : vector<4x8xi32>
    %91 = arith.cmpi eq, %88, %90 : vector<4x8xi32>
    %92 = arith.extui %91 : vector<4x8xi1> to vector<4x8xi32>
    %93 = arith.sitofp %92 : vector<4x8xi32> to vector<4x8xf32>
    %c2_i32_42 = arith.constant 2 : i32
    %94 = vector.broadcast %c2_i32_42 : i32 to vector<4x8xi32>
    %95 = arith.muli %94, %87 : vector<4x8xi32>
    %c1_i32_43 = arith.constant 1 : i32
    %96 = vector.broadcast %c1_i32_43 : i32 to vector<4x8xi32>
    %97 = arith.addi %95, %96 : vector<4x8xi32>
    %98 = arith.cmpi eq, %88, %97 : vector<4x8xi32>
    %99 = arith.extui %98 : vector<4x8xi1> to vector<4x8xi32>
    %100 = arith.sitofp %99 : vector<4x8xi32> to vector<4x8xf32>
    %cst_44 = arith.constant dense<0.000000e+00> : vector<4x32xf32>
    %101 = tpu.matmul %93, %86, %cst_44 {dimension_numbers = #tpu.dot_dimension_numbers<[1], [0], [0], [1], [0, 0, 1, 1], [], []>} : vector<4x8xf32>, vector<8x32xf32>, vector<4x32xf32> -> vector<4x32xf32>
    %cst_45 = arith.constant dense<0.000000e+00> : vector<4x32xf32>
    %102 = tpu.matmul %100, %86, %cst_45 {dimension_numbers = #tpu.dot_dimension_numbers<[1], [0], [0], [1], [0, 0, 1, 1], [], []>} : vector<4x8xf32>, vector<8x32xf32>, vector<4x32xf32> -> vector<4x32xf32>
    %103 = arith.maximumf %101, %102 : vector<4x32xf32>
    %104 = vector.extract_strided_slice %103 {offsets = [0, 0], sizes = [2, 32], strides = [1, 1]} : vector<4x32xf32> to vector<2x32xf32>
    %c0_46 = arith.constant 0 : index
    %c0_47 = arith.constant 0 : index
    %c0_48 = arith.constant 0 : index
    %105 = vector.load %arg11[%c0_46, %c0_47, %c0_48] : memref<2x2x32xf32, #tpu.memory_space<vmem>>, vector<1x2x32xf32>
    %106 = vector.shape_cast %105 : vector<1x2x32xf32> to vector<2x32xf32>
    %107 = vector.shape_cast %104 : vector<2x32xf32> to vector<1x2x32xf32>
    tpu.vector_store %arg11[%c0_46, %c0_47, %c0_48], %107 {strides = array<i32>} : memref<2x2x32xf32, #tpu.memory_space<vmem>>, vector<1x2x32xf32>,
    %108 = vector.extract_strided_slice %103 {offsets = [2, 0], sizes = [2, 32], strides = [1, 1]} : vector<4x32xf32> to vector<2x32xf32>
    %c1_49 = arith.constant 1 : index
    %c0_50 = arith.constant 0 : index
    %c0_51 = arith.constant 0 : index
    %109 = vector.load %arg11[%c1_49, %c0_50, %c0_51] : memref<2x2x32xf32, #tpu.memory_space<vmem>>, vector<1x2x32xf32>
    %110 = vector.shape_cast %109 : vector<1x2x32xf32> to vector<2x32xf32>
    %111 = vector.shape_cast %108 : vector<2x32xf32> to vector<1x2x32xf32>
    tpu.vector_store %arg11[%c1_49, %c0_50, %c0_51], %111 {strides = array<i32>} : memref<2x2x32xf32, #tpu.memory_space<vmem>>, vector<1x2x32xf32>,
    return
  }
  func.func @transform_0(%arg0: i32) -> (i32, i32, i32) {
    %c0_i32 = arith.constant 0 : i32
    %c0_i32_0 = arith.constant 0 : i32
    %c0_i32_1 = arith.constant 0 : i32
    return %arg0, %c0_i32, %c0_i32_0 : i32, i32, i32
  }
  func.func @transform_1(%arg0: i32) -> (i32, i32) {
    %c0_i32 = arith.constant 0 : i32
    %c0_i32_0 = arith.constant 0 : i32
    %c0_i32_1 = arith.constant 0 : i32
    return %c0_i32, %c0_i32_0 : i32, i32
  }
  func.func @transform_2(%arg0: i32) -> (i32, i32) {
    %c0_i32 = arith.constant 0 : i32
    %c0_i32_0 = arith.constant 0 : i32
    %c0_i32_1 = arith.constant 0 : i32
    return %c0_i32, %c0_i32_0 : i32, i32
  }
  func.func @transform_3(%arg0: i32) -> (i32, i32) {
    %c0_i32 = arith.constant 0 : i32
    %c0_i32_0 = arith.constant 0 : i32
    %c0_i32_1 = arith.constant 0 : i32
    return %c0_i32, %c0_i32_0 : i32, i32
  }
  func.func @transform_4(%arg0: i32) -> (i32, i32) {
    %c0_i32 = arith.constant 0 : i32
    %c0_i32_0 = arith.constant 0 : i32
    %c0_i32_1 = arith.constant 0 : i32
    return %c0_i32, %c0_i32_0 : i32, i32
  }
  func.func @transform_5(%arg0: i32) -> (i32, i32) {
    %c0_i32 = arith.constant 0 : i32
    %c0_i32_0 = arith.constant 0 : i32
    %c0_i32_1 = arith.constant 0 : i32
    return %c0_i32, %c0_i32_0 : i32, i32
  }
  func.func @transform_6(%arg0: i32) -> (i32, i32) {
    %c0_i32 = arith.constant 0 : i32
    %c0_i32_0 = arith.constant 0 : i32
    %c0_i32_1 = arith.constant 0 : i32
    return %c0_i32, %c0_i32_0 : i32, i32
  }
  func.func @transform_7(%arg0: i32) -> (i32, i32) {
    %c0_i32 = arith.constant 0 : i32
    %c0_i32_0 = arith.constant 0 : i32
    %c0_i32_1 = arith.constant 0 : i32
    return %c0_i32, %c0_i32_0 : i32, i32
  }
  func.func @transform_8(%arg0: i32) -> (i32, i32) {
    %c0_i32 = arith.constant 0 : i32
    %c0_i32_0 = arith.constant 0 : i32
    %c0_i32_1 = arith.constant 0 : i32
    return %c0_i32, %c0_i32_0 : i32, i32
  }
  func.func @transform_9(%arg0: i32) -> (i32, i32) {
    %c0_i32 = arith.constant 0 : i32
    %c0_i32_0 = arith.constant 0 : i32
    %c0_i32_1 = arith.constant 0 : i32
    return %c0_i32, %c0_i32_0 : i32, i32
  }
  func.func @transform_10(%arg0: i32) -> (i32, i32, i32) {
    %c0_i32 = arith.constant 0 : i32
    %c0_i32_0 = arith.constant 0 : i32
    %c0_i32_1 = arith.constant 0 : i32
    return %arg0, %c0_i32, %c0_i32_0 : i32, i32, i32
  }
}

</mosaic_0001>

<bundles_post_ra>
// kernel: tpu_custom_call.1
= control target key start
LH: loop header
LB: loop body
LE: loop exit
PB: predicated region body
PF: predicated region fallthrough
CT: control target
= control target key end

     0   :  { %vm51_vm0 = vcmask 1040384   ;;  %vm68_vm1 = vcmask 1046528   ;;  %s781_s0 = inlined_call_operand.vmem [shape: f32[2,16,2], index: 0, kind: input, shape index: {}]   ;;  %s782_s1 = inlined_call_operand.vmem [shape: f32[6,8], index: 1, kind: input, shape index: {}]   ;;  %s783_s2 = inlined_call_operand.vmem [shape: f32[1,8], index: 2, kind: input, shape index: {}]   ;;  %s784_s3 = inlined_call_operand.vmem [shape: f32[32,6], index: 3, kind: input, shape index: {}]   ;;  %s785_s4 = inlined_call_operand.vmem [shape: f32[24,16], index: 4, kind: input, shape index: {}]   ;;  %s786_s5 = inlined_call_operand.vmem [shape: f32[1,16], index: 5, kind: input, shape index: {}]   ;;  %s787_s6 = inlined_call_operand.vmem [shape: f32[16,24], index: 6, kind: input, shape index: {}]   ;;  %s788_s7 = inlined_call_operand.vmem [shape: f32[48,32], index: 7, kind: input, shape index: {}]   ;;  %s789_s8 = inlined_call_operand.vmem [shape: f32[1,32], index: 8, kind: input, shape index: {}]   ;;  %s790_s9 = inlined_call_operand.vmem [shape: f32[8,48], index: 9, kind: input, shape index: {}]   ;;  %s791_s10 = inlined_call_operand.hbm [shape: f32[2,2,32], index: 10, kind: output, shape index: {}]  }
   0x1   :  { %v36_v0 = vld [vmem:[%s781_s0] sm:$0xff]  ;;  %v37_v1 = vld [vmem:[%s781_s0 + $0x8] sm:$0xff]  ;;  %v514_v2 = vld [vmem:[%s781_s0 + $0x10] sm:$0xff] }
   0x2   :  { %v52_v3 = vrot.slane %v36_v0, 7  ;;  %v53_v4 = vrot.slane %v37_v1, 7  ;;  %v55_v5 = vrot.slane %v514_v2, 7  ;;  %v515_v6 = vld [vmem:[%s781_s0 + $0x18] sm:$0xff] }
   0x3   :  { %v57_v7 = vrot.slane %v515_v6, 7 }
   0x4   :  { %v54_v8 = vsel %vm51_vm0, %v52_v3, %v53_v4  ;;  %v64_v9 = vsel %vm51_vm0, 0.0, %v52_v3  ;;  %v56_v10 = vsel %vm51_vm0, %v53_v4, %v55_v5 }
   0x5   :  { %15 = vsyncpa [#allocation3], 0  ;;  %v69_v11 = vrot.slane %v64_v9, 1  ;;  %v70_v12 = vrot.slane %v54_v8, 1  ;;  %v72_v13 = vrot.slane %v56_v10, 1  ;;  %v58_v14 = vsel %vm51_vm0, %v55_v5, %v57_v7  ;;  %s572_s0 = smov 2  }
   0x6   :  { %v74_v17 = vrot.slane %v58_v14, 1  ;;  %v91_v18 = vrot.slane %v64_v9, 2  ;;  %v92_v19 = vrot.slane %v54_v8, 2  ;;  %v94_v20 = vrot.slane %v56_v10, 2  ;;  %s573_s21 = smov 4   ;;  %v43_v34 = vld [vmem:[%s784_s3] sm:$0xff] }
   0x7   :  { %v71_v15 = vsel %vm68_vm1, %v69_v11, %v70_v12  ;;  %v73_v16 = vsel %vm68_vm1, %v70_v12, %v72_v13  ;;  %vm90_vm2 = vcmask 1045504   ;;  %v96_v24 = vrot.slane %v58_v14, 2  ;;  %v41_v31 = vld [vmem:[%s782_s1] sm:$0x3f]  ;;  %v44_v42 = vld [vmem:[%s784_s3 + $0x8] sm:$0xff]  ;;  %v45_v47 = vld [vmem:[%s784_s3 + $0x10] sm:$0xff] }
   0x8   :  { %78 = vrot.lane.b32.xlu0 %v71_v15, %s572_s0  ;;  %80 = vrot.lane.b32.xlu1 %v73_v16, %s572_s0  ;;  %v75_v21 = vsel %vm68_vm1, %v72_v13, %v74_v17  ;;  %v93_v22 = vsel %vm90_vm2, %v91_v18, %v92_v19  ;;  %v95_v23 = vsel %vm90_vm2, %v92_v19, %v94_v20  ;;  %v65_v25 = vsel %vm51_vm0, %v57_v7, 0.0  ;;  %v46_v53 = vld [vmem:[%s784_s3 + $0x18] sm:$0xff]  ;;  %v543_v62 = vld [vmem:[%s783_s2] ss:$0 sm:$0xff]  ;;  %s575_s2 = smov 16   ;;  %s576_s3 = smov 8  }
   0x9   :  { %82 = vrot.lane.b32.xlu2 %v75_v21, %s572_s0  ;;  %v97_v26 = vsel %vm90_vm2, %v94_v20, %v96_v24  ;;  %v76_v27 = vrot.slane %v65_v25, 1  ;;  %v98_v28 = vrot.slane %v65_v25, 2  ;;  %516 = vmatpush.msk.msra.mxu0 %vm90_vm2, %v41_v31  ;;  %vm112_vm3 = vcmask 15360   ;;  %s577_s29 = smov 32   ;;  %s502_s18 = sshll.u32 %s791_s10, 4  ;;  %s503_s18 = int_to_ptr.hbm [resolvable:$true] %s502_s18 }
   0xa   :  { %vm117_vm4 = vcmask 31744   ;;  %vm129_vm5 = vcmask 48128   ;;  %v178_v58 = vlaneseq  ;;  %v574_v12 = vmov 0.0  }
   0xb   :  { %v77_v29 = vsel %vm68_vm1, %v74_v17, %v76_v27  ;;  %v99_v30 = vsel %vm90_vm2, %v96_v24, %v98_v28  ;;  %vm199_vm8 = vcmask 261120   ;;  %vm300_vm11 = vcmask 64512  }
   0xc   :  { %v179_v60 = vshrl.u32 %v178_v58, 7  ;;  %v182_v2 = vand.u32 127, %v178_v58  ;;  %vm303_vm12 = vcmask 130048   ;;  %vm311_vm13 = vcmask 195584  }
   0xd   :  { %vm421_vm14 = vcmask 392192   ;;  %vm491_vm15 = vcmask 254976  }
   0xe   :  { %v183_v61 = vmul.u32 2, %v179_v60  ;;  %v180_v4 = vadd.s32 8, %v179_v60 }
  0x10   :  { %100 = vrot.lane.b32.xlu0 %v93_v22, %s573_s21  ;;  %102 = vrot.lane.b32.xlu1 %v95_v23, %s573_s21  ;;  %v191_v3 = vadd.s32 1, %v183_v61  ;;  %vm185_vm7 = vcmp.eq.s32.totalorder %v182_v2, %v183_v61  ;;  %v393_v61 = vld [vmem:[%s788_s7 + $0x28] sm:$0xff] }
  0x11   :  { %104 = vrot.lane.b32.xlu2 %v97_v26, %s573_s21 }
  0x12   :  { %vm193_vm6 = vcmp.eq.s32.totalorder %v182_v2, %v191_v3 }
  0x13   :  { %v694_v13 = vsel %vm193_vm6, 1.0, %v574_v12 }
  0x18   :  { %84 = vrot.lane.b32.xlu0 %v77_v29, %s572_s0  ;;  %106 = vrot.lane.b32.xlu1 %v99_v30, %s573_s21 }
  0x63   :  { %v83_v39 = vpop.permute.xlu2 %82 }
  0x64   :  { %v115_v45 = vsel %vm112_vm3, %v56_v10, %v83_v39  ;;  %v262_v39 = vld [vmem:[%s785_s4 + $0x10] sm:$0xff] }
  0x65   :  { %331 = vmatpush.msra.mxu3 %v262_v39 }
  0x6b   :  { %v105_v46 = vpop.permute.xlu2 %104 }
  0x6c   :  { %v120_v48 = vsel %vm117_vm4, %v115_v45, %v105_v46 }
  0x6d   :  { %v124_v50 = vmul.f32 %v120_v48, %v45_v47 }
  0x7a   :  { %v79_v32 = vpop.permute.xlu0 %78  ;;  %v81_v33 = vpop.permute.xlu1 %80 }
  0x7b   :  { %v113_v35 = vsel %vm112_vm3, %v64_v9, %v79_v32  ;;  %v114_v40 = vsel %vm112_vm3, %v54_v8, %v81_v33  ;;  %v184_v9 = vmul.u32 2, %v180_v4 }
  0x7d   :  { %v192_v15 = vadd.s32 1, %v184_v9  ;;  %vm186_vm10 = vcmp.eq.s32.totalorder %v182_v2, %v184_v9 }
  0x7e   :  { %v522_v17 = vsel %vm186_vm10, 1.0, %v574_v12 }
  0x7f   :  { %vm194_vm9 = vcmp.eq.s32.totalorder %v182_v2, %v192_v15  ;;  %v389_v15 = vld [vmem:[%s788_s7 + $0x8] sm:$0xff] }
  0x80   :  { %v524_v16 = vsel %vm194_vm9, 1.0, %v574_v12 }
  0x82   :  { %v101_v36 = vpop.permute.xlu0 %100  ;;  %v103_v41 = vpop.permute.xlu1 %102 }
  0x83   :  { %v118_v37 = vsel %vm117_vm4, %v113_v35, %v101_v36  ;;  %v119_v43 = vsel %vm117_vm4, %v114_v40, %v103_v41  ;;  %v261_v40 = vld [vmem:[%s785_s4 + $0x8] sm:$0xff]  ;;  %v260_v41 = vld [vmem:[%s785_s4] sm:$0xff] }
  0x84   :  { %v122_v38 = vmul.f32 %v118_v37, %v43_v34  ;;  %v123_v44 = vmul.f32 %v119_v43, %v44_v42  ;;  %332 = vmatpush.msra.mxu3 %v261_v40  ;;  %v264_v43 = vld [vmem:[%s787_s6] sm:$0xff] }
  0x86   :  { %517 = vmatmul.msk.f32.vlgmr.msra.gmra.mxu0 %vm129_vm5, %v122_v38  ;;  %333 = vmatpush.msra.mxu3 %v260_v41 }
  0x8a   :  { %v85_v49 = vpop.permute.xlu0 %84  ;;  %v107_v52 = vpop.permute.xlu1 %106 }
  0x8b   :  { %v116_v51 = vsel %vm112_vm3, %v58_v14, %v85_v49  ;;  %v696_v14 = vsel %vm185_vm7, 1.0, %v574_v12 }
  0x8c   :  { %v121_v54 = vsel %vm117_vm4, %v116_v51, %v107_v52  ;;  %v265_v52 = vld [vmem:[%s787_s6 + $0x8] sm:$0xff] }
  0x8d   :  { %v125_v55 = vmul.f32 %v121_v54, %v46_v53 }
  0x8e   :  { %518 = vmatmul.msk.f32.gmra.mxu0 %vm129_vm5, %v123_v44 }
  0x96   :  { %519 = vmatmul.msk.f32.gmra.mxu0 %vm129_vm5, %v124_v50 }
  0x9e   :  { %520 = vmatmul.msk.f32.gmra.mxu0 %vm129_vm5, %v125_v55  ;;  %v544_v55 = vld [vmem:[%s786_s5] ss:$0 sm:$0xff] }
 0x103   :  { %v162_v56 = vpop.f32.mrf.mxu0 }
 0x104   :  { %v163_v7 = vadd.f32 %v543_v62, %v162_v56 }
 0x106   :  { %v174_v11 = vmax.f32 %v163_v7, 0.0 }
 0x10b   :  { %v165_v57 = vpop.f32.mrf.mxu0 }
 0x10c   :  { %v166_v5 = vadd.f32 %v543_v62, %v165_v57 }
 0x10e   :  { %v175_v10 = vmax.f32 %v166_v5, 0.0 }
 0x113   :  { %v168_v59 = vpop.f32.mrf.mxu0 }
 0x114   :  { %v169_v0 = vadd.f32 %v543_v62, %v168_v59 }
 0x116   :  { %v176_v8 = vmax.f32 %v169_v0, 0.0  ;;  %v390_v0 = vld [vmem:[%s788_s7 + $0x10] sm:$0xff] }
 0x11b   :  { %v171_v63 = vpop.f32.mrf.mxu0 }
 0x11c   :  { %v172_v1 = vadd.f32 %v543_v62, %v171_v63  ;;  %v392_v62 = vld [vmem:[%s788_s7 + $0x20] sm:$0xff]  ;;  %v391_v63 = vld [vmem:[%s788_s7 + $0x18] sm:$0xff] }
 0x11e   :  { %v177_v6 = vmax.f32 %v172_v1, 0.0 }
 0x120   :  { %218 = vmatpush.msra.mxu1 %v177_v6  ;;  %247 = vmatpush.msra.mxu2 %v177_v6 }
 0x122   :  { %219 = vmatpush.msra.mxu1 %v176_v8  ;;  %248 = vmatpush.msra.mxu2 %v176_v8 }
 0x124   :  { %220 = vmatpush.msra.mxu1 %v175_v10  ;;  %249 = vmatpush.msra.mxu2 %v175_v10 }
 0x126   :  { %221 = vmatpush.msra.mxu1 %v174_v11  ;;  %250 = vmatpush.msra.mxu2 %v174_v11 }
 0x127   :  { %527 = vmatmul.msk.f32.vlgmr.msra.gmra.mxu2 %vm199_vm8, %v694_v13  ;;  %525 = vmatmul.msk.f32.vlgmr.msra.gmra.mxu1 %vm199_vm8, %v696_v14 }
 0x128   :  { %435 = vmatpush.msrb.mxu2 %v393_v61 }
 0x12a   :  { %436 = vmatpush.msrb.mxu2 %v392_v62 }
 0x12c   :  { %437 = vmatpush.msrb.mxu2 %v391_v63 }
 0x12e   :  { %438 = vmatpush.msrb.mxu2 %v390_v0 }
 0x12f   :  { %528 = vmatmul.msk.f32.gmra.mxu2 %vm199_vm8, %v524_v16  ;;  %526 = vmatmul.msk.f32.gmra.mxu1 %vm199_vm8, %v522_v17  ;;  %v388_v16 = vld [vmem:[%s788_s7] sm:$0xff]  ;;  %s578_s7 = smov [#allocation2]  }
 0x130   :  { %439 = vmatpush.msrb.mxu2 %v389_v15 }
 0x132   :  { %440 = vmatpush.msrb.mxu2 %v388_v16 }
 0x1a4   :  { %v223_v18 = vpop.f32.mrf.mxu1 }
 0x1aa   :  { %v252_v19 = vpop.f32.mrf.mxu2 }
 0x1ab   :  { %v258_v20 = vmax.f32 %v223_v18, %v252_v19  ;;  %v395_v18 = vld [vmem:[%s790_s9] sm:$0xff]  ;;  %s500_s9 = sshll.u32 %s578_s7, 4  ;;  %s501_s9 = int_to_ptr.vmem [resolvable:$true] %s500_s9 }
 0x1ac   :  { %v226_v22 = vpop.f32.mrf.mxu1 }
 0x1ad   :  { %v268_v21 = vrot.slane %v258_v20, 7 }
 0x1af   :  { %v274_v25 = vsel %vm51_vm0, 0.0, %v268_v21 }
 0x1b0   :  { %v278_v27 = vrot.slane %v274_v25, 1  ;;  %v289_v30 = vrot.slane %v274_v25, 2 }
 0x1b2   :  { %v255_v23 = vpop.f32.mrf.mxu2 }
 0x1b3   :  { %v259_v24 = vmax.f32 %v226_v22, %v255_v23  ;;  %v545_v23 = vld [vmem:[%s789_s8] ss:$0 sm:$0xff] }
 0x1b5   :  { %v269_v26 = vrot.slane %v259_v24, 7 }
 0x1b7   :  { %v270_v28 = vsel %vm51_vm0, %v268_v21, %v269_v26  ;;  %v275_v29 = vsel %vm51_vm0, %v269_v26, 0.0 }
 0x1b8   :  { %v281_v31 = vrot.slane %v275_v29, 1  ;;  %v290_v32 = vrot.slane %v270_v28, 2  ;;  %v279_v33 = vrot.slane %v270_v28, 1  ;;  %v292_v37 = vrot.slane %v275_v29, 2 }
 0x1ba   :  { %v291_v34 = vsel %vm90_vm2, %v289_v30, %v290_v32  ;;  %v282_v35 = vsel %vm68_vm1, %v279_v33, %v281_v31  ;;  %v280_v36 = vsel %vm68_vm1, %v278_v27, %v279_v33  ;;  %v293_v38 = vsel %vm90_vm2, %v290_v32, %v292_v37 }
 0x1bb   :  { %294 = vrot.lane.b32.xlu0 %v291_v34, %s575_s2  ;;  %285 = vrot.lane.b32.xlu1 %v282_v35, %s576_s3 }
 0x1bc   :  { %283 = vrot.lane.b32.xlu2 %v280_v36, %s576_s3 }
 0x1c4   :  { %296 = vrot.lane.b32.xlu2 %v293_v38, %s575_s2 }
 0x216   :  { %v284_v42 = vpop.permute.xlu2 %283 }
 0x217   :  { %v301_v44 = vsel %vm300_vm11, %v274_v25, %v284_v42 }
 0x21e   :  { %v297_v50 = vpop.permute.xlu2 %296 }
 0x22d   :  { %v295_v45 = vpop.permute.xlu0 %294  ;;  %v286_v47 = vpop.permute.xlu1 %285 }
 0x22e   :  { %v304_v46 = vsel %vm303_vm12, %v301_v44, %v295_v45  ;;  %v302_v49 = vsel %vm300_vm11, %v270_v28, %v286_v47 }
 0x22f   :  { %v306_v48 = vmul.f32 %v304_v46, %v264_v43  ;;  %v305_v51 = vsel %vm303_vm12, %v302_v49, %v297_v50 }
 0x230   :  { %v307_v53 = vmul.f32 %v305_v51, %v265_v52 }
 0x231   :  { %529 = vmatmul.msk.f32.vlgmr.msra.gmra.mxu3 %vm311_vm13, %v306_v48 }
 0x239   :  { %530 = vmatmul.msk.f32.gmra.mxu3 %vm311_vm13, %v307_v53 }
 0x2b4   :  { %v335_v54 = vpop.f32.mrf.mxu3 }
 0x2b5   :  { %v336_v57 = vadd.f32 %v544_v55, %v335_v54 }
 0x2b7   :  { %v341_v60 = vmax.f32 %v336_v57, 0.0 }
 0x2bc   :  { %v338_v56 = vpop.f32.mrf.mxu3 }
 0x2bd   :  { %v339_v58 = vadd.f32 %v544_v55, %v338_v56 }
 0x2bf   :  { %v342_v59 = vmax.f32 %v339_v58, 0.0 }
 0x2c1   :  { %359 = vmatpush.msrb.mxu3 %v342_v59  ;;  %381 = vmatpush.msrb.mxu1 %v342_v59 }
 0x2c3   :  { %360 = vmatpush.msrb.mxu3 %v341_v60  ;;  %382 = vmatpush.msrb.mxu1 %v341_v60 }
 0x2c4   :  { %531 = vmatmul.msk.f32.vlgmr.msrb.gmra.mxu3 %vm303_vm12, %v696_v14  ;;  %532 = vmatmul.msk.f32.vlgmr.msrb.gmra.mxu1 %vm303_vm12, %v694_v13 }
 0x341   :  { %v384_v1 = vpop.f32.mrf.mxu1 }
 0x347   :  { %v362_v2 = vpop.f32.mrf.mxu3 }
 0x348   :  { %v387_v3 = vmax.f32 %v362_v2, %v384_v1 }
 0x34a   :  { %v397_v4 = vrot.slane %v387_v3, 7 }
 0x34c   :  { %v399_v5 = vsel %vm51_vm0, 0.0, %v397_v4  ;;  %v400_v6 = vsel %vm51_vm0, %v397_v4, 0.0  ;;  %vm494_vm0 = vcmask 257026  }
 0x34d   :  { %v403_v7 = vrot.slane %v399_v5, 1  ;;  %v404_v8 = vrot.slane %v400_v6, 1  ;;  %v409_v9 = vrot.slane %v399_v5, 2  ;;  %v410_v10 = vrot.slane %v400_v6, 2 }
 0x34f   :  { %v405_v11 = vsel %vm68_vm1, %v403_v7, %v404_v8  ;;  %v411_v12 = vsel %vm90_vm2, %v409_v9, %v410_v10 }
 0x350   :  { %406 = vrot.lane.b32.xlu0 %v405_v11, %s575_s2  ;;  %412 = vrot.lane.b32.xlu1 %v411_v12, %s577_s29 }
 0x3c2   :  { %v407_v17 = vpop.permute.xlu0 %406  ;;  %v413_v19 = vpop.permute.xlu1 %412 }
 0x3c3   :  { %v415_v20 = vsel %vm303_vm12, %v399_v5, %v407_v17 }
 0x3c4   :  { %v416_v21 = vsel %vm199_vm8, %v415_v20, %v413_v19 }
 0x3c5   :  { %v417_v22 = vmul.f32 %v416_v21, %v395_v18 }
 0x3c7   :  { %533 = vmatmul.msk.f32.vlgmr.msrb.gmra.mxu2 %vm421_vm14, %v417_v22 }
 0x44a   :  { %v442_v24 = vpop.f32.mrf.mxu2 }
 0x44b   :  { %v443_v25 = vadd.f32 %v545_v23, %v442_v24 }
 0x44d   :  { %v445_v26 = vmax.f32 %v443_v25, 0.0 }
 0x44f   :  { %463 = vmatpush.msra.mxu3 %v445_v26  ;;  %485 = vmatpush.msra.mxu1 %v445_v26 }
 0x450   :  { %534 = vmatmul.msk.f32.vlgmr.msra.gmra.mxu3 %vm300_vm11, %v696_v14  ;;  %535 = vmatmul.msk.f32.vlgmr.msra.gmra.mxu1 %vm300_vm11, %v694_v13 }
 0x4cd   :  { %v487_v27 = vpop.f32.mrf.mxu1 }
 0x4d3   :  { %v465_v28 = vpop.f32.mrf.mxu3 }
 0x4d4   :  { %v490_v29 = vmax.f32 %v465_v28, %v487_v27 }
 0x4d6   :  { %492 = vst.msk [vmem:[#allocation2] sm:$0x3] %vm491_vm15, %v490_v29 }
 0x4d7   :  { %495 = vst.msk [vmem:[#allocation2] sm:$0xc] %vm494_vm0, %v490_v29 }
 0x4d8   :  { %508 = dma.vmem_to_hbm [thread:$0]  %s501_s9, 64, %s503_s18, [#allocation3], %s577_s29, %s577_s29, %s572_s0  }
 0x4d9   :  { %570 = dma.done.wait [#allocation3], 64  }
 0x4da   :  { %571 = vsyncadd [#allocation3], 4294967232 }
 0x4db   :  { %513 = vsyncpa [#allocation3], 1 }

</bundles_post_ra>
